<compile_context>
chip_gen: v7x
topology: tpu7x:2x2x1
jax: 0.10.0
libtpu: 0.0.40
codegen_flags: <defaults>
</compile_context>

<pallas_src>
import functools

import jax
import jax.numpy as jnp
from jax.experimental import pallas as pl
from jax.experimental.pallas import tpu as pltpu

_LANE = 128
_SUBLANE_F32 = 8
_SUBLANE_BF16 = 16


def _round_up(n: int, m: int) -> int:
    return -(-n // m) * m


def _vmem_cap_bytes() -> int:
    """Per-TensorCore VMEM cap with headroom, generation-aware."""
    try:
        cap = int(pltpu.get_tpu_info().vmem_capacity_bytes)
    except Exception:
        cap = 64 << 20  # safe (v7x-sized) fallback
    if cap <= (64 << 20):
        # v7x: 64 MiB/TC -> leave headroom for Mosaic internal scratch.
        return int(cap * 0.80)
    # v5e / v6e: 128 MiB physical -> allow large resident weight sets + tiles.
    return min(cap - (28 << 20), 100 << 20)


def _mlp_kernel(*refs, num_layers, relu_flags, compute_dtype):
    """refs = (x_ref, w0, b0, w1, b1, ..., w{L-1}, b{L-1}, o_ref).

    x_ref : [TM, Kp]      padded, lane-dense token tile (compute_dtype)
    w_i   : [Kp_i, Np_i]  padded W^T (compute_dtype), full resident block
    b_i   : [1, Np_i]     f32 padded bias
    o_ref : [TM, Np_last] lane-dense output tile
    The whole layer chain runs with activations resident on-chip.
    """
    x_ref = refs[0]
    o_ref = refs[-1]
    wb = refs[1:-1]

    h = x_ref[...]  # stays in compute_dtype; no initial upcast pass
    for i in range(num_layers):
        w = wb[2 * i][...]                 # compute_dtype
        b = wb[2 * i + 1][...]             # (1, Np) f32
        y = jnp.dot(h, w, preferred_element_type=jnp.float32)
        y = y + b                          # bias + ReLU epilogue in f32
        if relu_flags[i]:
            y = jnp.maximum(y, 0.0)
        if i < num_layers - 1:
            h = y.astype(compute_dtype)    # cast only inter-layer activations
        else:
            o_ref[...] = y.astype(o_ref.dtype)


def fused_mlp_forward(x2, weights, biases, relu_flags, *,
                      compute_dtype=jnp.bfloat16, out_dtype=None,
                      tm_target=512):
    """x2: [M, K] unpadded tokens.  weights[i]: [Kp_i, Np_i] padded W^T
    (compute_dtype).  biases[i]: [1, Np_i] f32 padded.
    Returns [M, Np_last] in out_dtype (caller slices the feature dim)."""
    if out_dtype is None:
        out_dtype = compute_dtype
    M, K = x2.shape
    num_layers = len(weights)
    Kp = weights[0].shape[0]
    Np_last = weights[-1].shape[1]
    max_np = max(w.shape[1] for w in weights)

    in_item = jnp.dtype(compute_dtype).itemsize
    out_item = jnp.dtype(out_dtype).itemsize
    row_align = _SUBLANE_BF16 if in_item < 4 else _SUBLANE_F32

    # Row tiling: aligned token tile, 1-D "parallel" grid over token tiles.
    M8 = _round_up(max(M, 1), row_align)
    TM = min(_round_up(tm_target, row_align), M8)

    cap = _vmem_cap_bytes()

    def est_bytes(tm, weight_buffers):
        e = 2 * tm * Kp * in_item                 # double-buffered input tile
        e += 2 * tm * Np_last * out_item          # double-buffered output tile
        e += weight_buffers * sum(                # resident weights + biases
            w.size * w.dtype.itemsize + b.size * b.dtype.itemsize
            for w, b in zip(weights, biases))
        e += 2 * tm * max_np * 4                  # f32 accumulator + epilogue temp
        e += tm * max_np * in_item                # compute_dtype activation copy
        return e

    # Shrink the token tile if the conservative (double-buffered weights)
    # estimate would blow the per-TC budget.
    while est_bytes(TM, 2) > cap and TM > row_align:
        TM = _round_up(max(TM // 2, row_align), row_align)

    M_pad = _round_up(M8, TM)
    vmem_limit = int(min(max(int(1.5 * est_bytes(TM, 2)), 32 << 20), cap))

    # Skip the wrapper-side pad (extra HBM read+write) when already aligned.
    if (M_pad == M) and (Kp == K):
        xp = x2.astype(compute_dtype)
    else:
        xp = jnp.pad(x2.astype(compute_dtype), ((0, M_pad - M), (0, Kp - K)))

    kernel = functools.partial(
        _mlp_kernel,
        num_layers=num_layers,
        relu_flags=tuple(bool(f) for f in relu_flags),
        compute_dtype=compute_dtype,
    )
    flat_params = [a for pair in zip(weights, biases) for a in pair]

    def _run(single_buffer_weights):
        in_specs = [pl.BlockSpec((TM, Kp), lambda i: (i, 0))]
        for w, b in zip(weights, biases):
            kp_i, np_i = w.shape
            if single_buffer_weights:
                # Constant index_map -> no need for double buffering.
                in_specs.append(pl.BlockSpec((kp_i, np_i), lambda i: (0, 0),
                                             pipeline_mode=pl.Buffered(1)))
                in_specs.append(pl.BlockSpec((1, np_i), lambda i: (0, 0),
                                             pipeline_mode=pl.Buffered(1)))
            else:
                in_specs.append(pl.BlockSpec((kp_i, np_i), lambda i: (0, 0)))
                in_specs.append(pl.BlockSpec((1, np_i), lambda i: (0, 0)))
        out_specs = pl.BlockSpec((TM, Np_last), lambda i: (i, 0))
        return pl.pallas_call(
            kernel,
            out_shape=jax.ShapeDtypeStruct((M_pad, Np_last), out_dtype),
            grid=(M_pad // TM,),
            in_specs=in_specs,
            out_specs=out_specs,
            compiler_params=pltpu.CompilerParams(
                dimension_semantics=("parallel",),
                vmem_limit_bytes=vmem_limit),
        )(xp, *flat_params)

    try:
        out = _run(single_buffer_weights=True)
    except Exception:
        # Fallback: default (double) buffering if Buffered(1) is rejected.
        out = _run(single_buffer_weights=False)
    return out[:M]


class PallasMLP:
    """JAX/Pallas equivalent of the DETR MLP module (forward only)."""

    def __init__(self, input_dim, hidden_dim, output_dim, num_layers,
                 relu_last=False, key=None, compute_dtype=jnp.bfloat16,
                 out_dtype=None):
        self.input_dim = input_dim
        self.output_dim = output_dim
        self.num_layers = num_layers
        self.relu_last = relu_last
        self.compute_dtype = compute_dtype
        self.out_dtype = compute_dtype if out_dtype is None else out_dtype
        if key is None:
            key = jax.random.PRNGKey(0)

        h = [hidden_dim] * (num_layers - 1)
        dims_in = [input_dim] + h
        dims_out = h + [output_dim]

        self.ref_params = []      # unpadded (W^T [in,out], b [out]) in f32
        self.weights_padded = []  # [Kp, Np] compute_dtype, zero-padded to x128
        self.biases_padded = []   # [1, Np] f32, zero-padded to x128
        for n, k in zip(dims_in, dims_out):
            key, wk, bk = jax.random.split(key, 3)
            # Deterministic init mimicking nn.Linear uniform(-1/sqrt(n), 1/sqrt(n)).
            bound = 1.0 / float(n) ** 0.5
            w = jax.random.uniform(wk, (k, n), dtype=jnp.float32,
                                   minval=-bound, maxval=bound)
            b = jax.random.uniform(bk, (k,), dtype=jnp.float32,
                                   minval=-bound, maxval=bound)
            w_t = jnp.transpose(w)  # [in, out] so the kernel does x @ W^T
            self.ref_params.append((w_t, b))

            kp, np_ = _round_up(n, _LANE), _round_up(k, _LANE)
            w_pad = jnp.zeros((kp, np_), dtype=compute_dtype)
            w_pad = w_pad.at[:n, :k].set(w_t.astype(compute_dtype))
            b_pad = jnp.zeros((1, np_), dtype=jnp.float32)
            b_pad = b_pad.at[0, :k].set(b)
            self.weights_padded.append(w_pad)
            self.biases_padded.append(b_pad)

        self.relu_flags = tuple(
            (i < num_layers - 1) or relu_last for i in range(num_layers))

    def __call__(self, x):
        # Accept arbitrary leading dims like nn.Linear; flatten to [M, K].
        lead = x.shape[:-1]
        x2 = x.reshape((-1, x.shape[-1]))
        y = fused_mlp_forward(x2, self.weights_padded, self.biases_padded,
                              self.relu_flags,
                              compute_dtype=self.compute_dtype,
                              out_dtype=self.out_dtype)
        y = y[:, : self.output_dim]
        return y.reshape(lead + (self.output_dim,))


def _reference_forward(mlp: PallasMLP, x):
    """Pure-JAX f32 reference (unpadded params) for correctness check."""
    lead = x.shape[:-1]
    x2 = x.reshape((-1, x.shape[-1])).astype(jnp.float32)
    for i, (w_t, b) in enumerate(mlp.ref_params):
        y = jnp.dot(x2, w_t, preferred_element_type=jnp.float32) + b
        if mlp.relu_flags[i]:
            y = jnp.maximum(y, 0.0)
        x2 = y
    return x2.reshape(lead + (x2.shape[-1],))


if __name__ == "__main__":
    key = jax.random.PRNGKey(0)
    key, xk, pk = jax.random.split(key, 3)

    # Small shapes consistent with the module: batch=2, seq=8, input_dim=16,
    # hidden_dim=32, output_dim=8, num_layers=3 (ReLU on first two layers only).
    batch, seq, input_dim, hidden_dim, output_dim, num_layers = 2, 8, 16, 32, 8, 3
    x = jax.random.normal(xk, (batch, seq, input_dim), dtype=jnp.float32)

    # Default bf16 MXU path (perf config) — loose tolerance vs. f32 reference.
    mlp_bf16 = PallasMLP(input_dim, hidden_dim, output_dim, num_layers,
                         relu_last=False, key=pk,
                         compute_dtype=jnp.bfloat16)
    out_bf16 = jax.block_until_ready(mlp_bf16(x))
    ref = _reference_forward(mlp_bf16, x)
    assert out_bf16.shape == (batch, seq, output_dim)
    assert out_bf16.dtype == jnp.bfloat16
    assert jnp.allclose(out_bf16.astype(jnp.float32), ref, atol=3e-2, rtol=3e-2)

    # f32 path — tight tolerance check of the kernel structure.
    mlp_f32 = PallasMLP(input_dim, hidden_dim, output_dim, num_layers,
                        relu_last=False, key=pk,
                        compute_dtype=jnp.float32, out_dtype=jnp.float32)
    out_f32 = jax.block_until_ready(mlp_f32(x))
    ref_f32 = _reference_forward(mlp_f32, x)
    assert out_f32.shape == (batch, seq, output_dim)
    assert jnp.allclose(out_f32, ref_f32, atol=1e-5, rtol=1e-5)

    print("KERNEL_OK")
</pallas_src>

<mosaic_0001>
module attributes {stable_mosaic.version = 11 : i64} {
  func.func @_mlp_kernel(%arg0: i32, %arg1: memref<16x128xbf16, #tpu.memory_space<vmem>>, %arg2: memref<128x128xbf16, #tpu.memory_space<vmem>>, %arg3: memref<1x128xf32, #tpu.memory_space<vmem>>, %arg4: memref<128x128xbf16, #tpu.memory_space<vmem>>, %arg5: memref<1x128xf32, #tpu.memory_space<vmem>>, %arg6: memref<128x128xbf16, #tpu.memory_space<vmem>>, %arg7: memref<1x128xf32, #tpu.memory_space<vmem>>, %arg8: memref<16x128xbf16, #tpu.memory_space<vmem>>) attributes {dimension_semantics = [#tpu.dimension_semantics<parallel>], iteration_bounds = array<i64: 1>, scalar_prefetch = 0 : i64, scratch_operands = 0 : i64, tpu.core_type = #tpu.core_type<tc>, window_params = [{transform_indices = @transform_0, window_bounds = array<i64: 16, 128>}, {pipeline_mode = #tpu.pipeline_mode<synchronous>, transform_indices = @transform_1, window_bounds = array<i64: 128, 128>}, {pipeline_mode = #tpu.pipeline_mode<synchronous>, transform_indices = @transform_2, window_bounds = array<i64: 1, 128>}, {pipeline_mode = #tpu.pipeline_mode<synchronous>, transform_indices = @transform_3, window_bounds = array<i64: 128, 128>}, {pipeline_mode = #tpu.pipeline_mode<synchronous>, transform_indices = @transform_4, window_bounds = array<i64: 1, 128>}, {pipeline_mode = #tpu.pipeline_mode<synchronous>, transform_indices = @transform_5, window_bounds = array<i64: 128, 128>}, {pipeline_mode = #tpu.pipeline_mode<synchronous>, transform_indices = @transform_6, window_bounds = array<i64: 1, 128>}, {transform_indices = @transform_7, window_bounds = array<i64: 16, 128>}]} {
    %c0 = arith.constant 0 : index
    %c0_0 = arith.constant 0 : index
    %0 = vector.load %arg1[%c0, %c0_0] : memref<16x128xbf16, #tpu.memory_space<vmem>>, vector<16x128xbf16>
    %c0_1 = arith.constant 0 : index
    %c0_2 = arith.constant 0 : index
    %1 = vector.load %arg2[%c0_1, %c0_2] : memref<128x128xbf16, #tpu.memory_space<vmem>>, vector<128x128xbf16>
    %c0_3 = arith.constant 0 : index
    %c0_4 = arith.constant 0 : index
    %2 = vector.load %arg3[%c0_3, %c0_4] : memref<1x128xf32, #tpu.memory_space<vmem>>, vector<1x128xf32>
    %cst = arith.constant dense<0.000000e+00> : vector<16x128xf32>
    %3 = tpu.matmul %0, %1, %cst {dimension_numbers = #tpu.dot_dimension_numbers<[1], [0], [0], [1], [0, 0, 1, 1], [], []>} : vector<16x128xbf16>, vector<128x128xbf16>, vector<16x128xf32> -> vector<16x128xf32>
    %4 = vector.broadcast %2 : vector<1x128xf32> to vector<16x128xf32>
    %5 = arith.addf %3, %4 : vector<16x128xf32>
    %cst_5 = arith.constant 0.000000e+00 : f32
    %6 = vector.broadcast %cst_5 : f32 to vector<16x128xf32>
    %7 = arith.maximumf %5, %6 : vector<16x128xf32>
    %8 = arith.truncf %7 : vector<16x128xf32> to vector<16x128xbf16>
    %c0_6 = arith.constant 0 : index
    %c0_7 = arith.constant 0 : index
    %9 = vector.load %arg4[%c0_6, %c0_7] : memref<128x128xbf16, #tpu.memory_space<vmem>>, vector<128x128xbf16>
    %c0_8 = arith.constant 0 : index
    %c0_9 = arith.constant 0 : index
    %10 = vector.load %arg5[%c0_8, %c0_9] : memref<1x128xf32, #tpu.memory_space<vmem>>, vector<1x128xf32>
    %cst_10 = arith.constant dense<0.000000e+00> : vector<16x128xf32>
    %11 = tpu.matmul %8, %9, %cst_10 {dimension_numbers = #tpu.dot_dimension_numbers<[1], [0], [0], [1], [0, 0, 1, 1], [], []>} : vector<16x128xbf16>, vector<128x128xbf16>, vector<16x128xf32> -> vector<16x128xf32>
    %12 = vector.broadcast %10 : vector<1x128xf32> to vector<16x128xf32>
    %13 = arith.addf %11, %12 : vector<16x128xf32>
    %cst_11 = arith.constant 0.000000e+00 : f32
    %14 = vector.broadcast %cst_11 : f32 to vector<16x128xf32>
    %15 = arith.maximumf %13, %14 : vector<16x128xf32>
    %16 = arith.truncf %15 : vector<16x128xf32> to vector<16x128xbf16>
    %c0_12 = arith.constant 0 : index
    %c0_13 = arith.constant 0 : index
    %17 = vector.load %arg6[%c0_12, %c0_13] : memref<128x128xbf16, #tpu.memory_space<vmem>>, vector<128x128xbf16>
    %c0_14 = arith.constant 0 : index
    %c0_15 = arith.constant 0 : index
    %18 = vector.load %arg7[%c0_14, %c0_15] : memref<1x128xf32, #tpu.memory_space<vmem>>, vector<1x128xf32>
    %cst_16 = arith.constant dense<0.000000e+00> : vector<16x128xf32>
    %19 = tpu.matmul %16, %17, %cst_16 {dimension_numbers = #tpu.dot_dimension_numbers<[1], [0], [0], [1], [0, 0, 1, 1], [], []>} : vector<16x128xbf16>, vector<128x128xbf16>, vector<16x128xf32> -> vector<16x128xf32>
    %20 = vector.broadcast %18 : vector<1x128xf32> to vector<16x128xf32>
    %21 = arith.addf %19, %20 : vector<16x128xf32>
    %22 = arith.truncf %21 : vector<16x128xf32> to vector<16x128xbf16>
    %c0_17 = arith.constant 0 : index
    %c0_18 = arith.constant 0 : index
    %23 = vector.load %arg8[%c0_17, %c0_18] : memref<16x128xbf16, #tpu.memory_space<vmem>>, vector<16x128xbf16>
    tpu.vector_store %arg8[%c0_17, %c0_18], %22 {strides = array<i32>} : memref<16x128xbf16, #tpu.memory_space<vmem>>, vector<16x128xbf16>,
    return
  }
  func.func @transform_0(%arg0: i32) -> (i32, i32) {
    %c0_i32 = arith.constant 0 : i32
    %c0_i32_0 = arith.constant 0 : i32
    return %arg0, %c0_i32 : i32, i32
  }
  func.func @transform_1(%arg0: i32) -> (i32, i32) {
    %c0_i32 = arith.constant 0 : i32
    %c0_i32_0 = arith.constant 0 : i32
    %c0_i32_1 = arith.constant 0 : i32
    return %c0_i32, %c0_i32_0 : i32, i32
  }
  func.func @transform_2(%arg0: i32) -> (i32, i32) {
    %c0_i32 = arith.constant 0 : i32
    %c0_i32_0 = arith.constant 0 : i32
    %c0_i32_1 = arith.constant 0 : i32
    return %c0_i32, %c0_i32_0 : i32, i32
  }
  func.func @transform_3(%arg0: i32) -> (i32, i32) {
    %c0_i32 = arith.constant 0 : i32
    %c0_i32_0 = arith.constant 0 : i32
    %c0_i32_1 = arith.constant 0 : i32
    return %c0_i32, %c0_i32_0 : i32, i32
  }
  func.func @transform_4(%arg0: i32) -> (i32, i32) {
    %c0_i32 = arith.constant 0 : i32
    %c0_i32_0 = arith.constant 0 : i32
    %c0_i32_1 = arith.constant 0 : i32
    return %c0_i32, %c0_i32_0 : i32, i32
  }
  func.func @transform_5(%arg0: i32) -> (i32, i32) {
    %c0_i32 = arith.constant 0 : i32
    %c0_i32_0 = arith.constant 0 : i32
    %c0_i32_1 = arith.constant 0 : i32
    return %c0_i32, %c0_i32_0 : i32, i32
  }
  func.func @transform_6(%arg0: i32) -> (i32, i32) {
    %c0_i32 = arith.constant 0 : i32
    %c0_i32_0 = arith.constant 0 : i32
    %c0_i32_1 = arith.constant 0 : i32
    return %c0_i32, %c0_i32_0 : i32, i32
  }
  func.func @transform_7(%arg0: i32) -> (i32, i32) {
    %c0_i32 = arith.constant 0 : i32
    %c0_i32_0 = arith.constant 0 : i32
    return %arg0, %c0_i32 : i32, i32
  }
}

module attributes {stable_mosaic.version = 11 : i64} {
  func.func @_mlp_kernel(%arg0: i32, %arg1: memref<16x128xbf16, #tpu.memory_space<vmem>>, %arg2: memref<128x128xbf16, #tpu.memory_space<vmem>>, %arg3: memref<1x128xf32, #tpu.memory_space<vmem>>, %arg4: memref<128x128xbf16, #tpu.memory_space<vmem>>, %arg5: memref<1x128xf32, #tpu.memory_space<vmem>>, %arg6: memref<128x128xbf16, #tpu.memory_space<vmem>>, %arg7: memref<1x128xf32, #tpu.memory_space<vmem>>, %arg8: memref<16x128xbf16, #tpu.memory_space<vmem>>) attributes {dimension_semantics = [#tpu.dimension_semantics<parallel>], iteration_bounds = array<i64: 1>, scalar_prefetch = 0 : i64, scratch_operands = 0 : i64, tpu.core_type = #tpu.core_type<tc>, window_params = [{transform_indices = @transform_0, window_bounds = array<i64: 16, 128>}, {pipeline_mode = #tpu.pipeline_mode<synchronous>, transform_indices = @transform_1, window_bounds = array<i64: 128, 128>}, {pipeline_mode = #tpu.pipeline_mode<synchronous>, transform_indices = @transform_2, window_bounds = array<i64: 1, 128>}, {pipeline_mode = #tpu.pipeline_mode<synchronous>, transform_indices = @transform_3, window_bounds = array<i64: 128, 128>}, {pipeline_mode = #tpu.pipeline_mode<synchronous>, transform_indices = @transform_4, window_bounds = array<i64: 1, 128>}, {pipeline_mode = #tpu.pipeline_mode<synchronous>, transform_indices = @transform_5, window_bounds = array<i64: 128, 128>}, {pipeline_mode = #tpu.pipeline_mode<synchronous>, transform_indices = @transform_6, window_bounds = array<i64: 1, 128>}, {transform_indices = @transform_7, window_bounds = array<i64: 16, 128>}]} {
    %c0 = arith.constant 0 : index
    %c0_0 = arith.constant 0 : index
    %0 = vector.load %arg1[%c0, %c0_0] : memref<16x128xbf16, #tpu.memory_space<vmem>>, vector<16x128xbf16>
    %c0_1 = arith.constant 0 : index
    %c0_2 = arith.constant 0 : index
    %1 = vector.load %arg2[%c0_1, %c0_2] : memref<128x128xbf16, #tpu.memory_space<vmem>>, vector<128x128xbf16>
    %c0_3 = arith.constant 0 : index
    %c0_4 = arith.constant 0 : index
    %2 = vector.load %arg3[%c0_3, %c0_4] : memref<1x128xf32, #tpu.memory_space<vmem>>, vector<1x128xf32>
    %cst = arith.constant dense<0.000000e+00> : vector<16x128xf32>
    %3 = tpu.matmul %0, %1, %cst {dimension_numbers = #tpu.dot_dimension_numbers<[1], [0], [0], [1], [0, 0, 1, 1], [], []>} : vector<16x128xbf16>, vector<128x128xbf16>, vector<16x128xf32> -> vector<16x128xf32>
    %4 = vector.broadcast %2 : vector<1x128xf32> to vector<16x128xf32>
    %5 = arith.addf %3, %4 : vector<16x128xf32>
    %cst_5 = arith.constant 0.000000e+00 : f32
    %6 = vector.broadcast %cst_5 : f32 to vector<16x128xf32>
    %7 = arith.maximumf %5, %6 : vector<16x128xf32>
    %8 = arith.truncf %7 : vector<16x128xf32> to vector<16x128xbf16>
    %c0_6 = arith.constant 0 : index
    %c0_7 = arith.constant 0 : index
    %9 = vector.load %arg4[%c0_6, %c0_7] : memref<128x128xbf16, #tpu.memory_space<vmem>>, vector<128x128xbf16>
    %c0_8 = arith.constant 0 : index
    %c0_9 = arith.constant 0 : index
    %10 = vector.load %arg5[%c0_8, %c0_9] : memref<1x128xf32, #tpu.memory_space<vmem>>, vector<1x128xf32>
    %cst_10 = arith.constant dense<0.000000e+00> : vector<16x128xf32>
    %11 = tpu.matmul %8, %9, %cst_10 {dimension_numbers = #tpu.dot_dimension_numbers<[1], [0], [0], [1], [0, 0, 1, 1], [], []>} : vector<16x128xbf16>, vector<128x128xbf16>, vector<16x128xf32> -> vector<16x128xf32>
    %12 = vector.broadcast %10 : vector<1x128xf32> to vector<16x128xf32>
    %13 = arith.addf %11, %12 : vector<16x128xf32>
    %cst_11 = arith.constant 0.000000e+00 : f32
    %14 = vector.broadcast %cst_11 : f32 to vector<16x128xf32>
    %15 = arith.maximumf %13, %14 : vector<16x128xf32>
    %16 = arith.truncf %15 : vector<16x128xf32> to vector<16x128xbf16>
    %c0_12 = arith.constant 0 : index
    %c0_13 = arith.constant 0 : index
    %17 = vector.load %arg6[%c0_12, %c0_13] : memref<128x128xbf16, #tpu.memory_space<vmem>>, vector<128x128xbf16>
    %c0_14 = arith.constant 0 : index
    %c0_15 = arith.constant 0 : index
    %18 = vector.load %arg7[%c0_14, %c0_15] : memref<1x128xf32, #tpu.memory_space<vmem>>, vector<1x128xf32>
    %cst_16 = arith.constant dense<0.000000e+00> : vector<16x128xf32>
    %19 = tpu.matmul %16, %17, %cst_16 {dimension_numbers = #tpu.dot_dimension_numbers<[1], [0], [0], [1], [0, 0, 1, 1], [], []>} : vector<16x128xbf16>, vector<128x128xbf16>, vector<16x128xf32> -> vector<16x128xf32>
    %20 = vector.broadcast %18 : vector<1x128xf32> to vector<16x128xf32>
    %21 = arith.addf %19, %20 : vector<16x128xf32>
    %22 = arith.truncf %21 : vector<16x128xf32> to vector<16x128xbf16>
    %c0_17 = arith.constant 0 : index
    %c0_18 = arith.constant 0 : index
    %23 = vector.load %arg8[%c0_17, %c0_18] : memref<16x128xbf16, #tpu.memory_space<vmem>>, vector<16x128xbf16>
    tpu.vector_store %arg8[%c0_17, %c0_18], %22 {strides = array<i32>} : memref<16x128xbf16, #tpu.memory_space<vmem>>, vector<16x128xbf16>,
    return
  }
  func.func @transform_0(%arg0: i32) -> (i32, i32) {
    %c0_i32 = arith.constant 0 : i32
    %c0_i32_0 = arith.constant 0 : i32
    return %arg0, %c0_i32 : i32, i32
  }
  func.func @transform_1(%arg0: i32) -> (i32, i32) {
    %c0_i32 = arith.constant 0 : i32
    %c0_i32_0 = arith.constant 0 : i32
    %c0_i32_1 = arith.constant 0 : i32
    return %c0_i32, %c0_i32_0 : i32, i32
  }
  func.func @transform_2(%arg0: i32) -> (i32, i32) {
    %c0_i32 = arith.constant 0 : i32
    %c0_i32_0 = arith.constant 0 : i32
    %c0_i32_1 = arith.constant 0 : i32
    return %c0_i32, %c0_i32_0 : i32, i32
  }
  func.func @transform_3(%arg0: i32) -> (i32, i32) {
    %c0_i32 = arith.constant 0 : i32
    %c0_i32_0 = arith.constant 0 : i32
    %c0_i32_1 = arith.constant 0 : i32
    return %c0_i32, %c0_i32_0 : i32, i32
  }
  func.func @transform_4(%arg0: i32) -> (i32, i32) {
    %c0_i32 = arith.constant 0 : i32
    %c0_i32_0 = arith.constant 0 : i32
    %c0_i32_1 = arith.constant 0 : i32
    return %c0_i32, %c0_i32_0 : i32, i32
  }
  func.func @transform_5(%arg0: i32) -> (i32, i32) {
    %c0_i32 = arith.constant 0 : i32
    %c0_i32_0 = arith.constant 0 : i32
    %c0_i32_1 = arith.constant 0 : i32
    return %c0_i32, %c0_i32_0 : i32, i32
  }
  func.func @transform_6(%arg0: i32) -> (i32, i32) {
    %c0_i32 = arith.constant 0 : i32
    %c0_i32_0 = arith.constant 0 : i32
    %c0_i32_1 = arith.constant 0 : i32
    return %c0_i32, %c0_i32_0 : i32, i32
  }
  func.func @transform_7(%arg0: i32) -> (i32, i32) {
    %c0_i32 = arith.constant 0 : i32
    %c0_i32_0 = arith.constant 0 : i32
    return %arg0, %c0_i32 : i32, i32
  }
}

</mosaic_0001>

<bundles_post_ra>
// kernel: tpu_custom_call.1
= control target key start
LH: loop header
LB: loop body
LE: loop exit
PB: predicated region body
PF: predicated region fallthrough
CT: control target
= control target key end

     0   :  { %12 = vsyncpa [#allocation3], 0  ;;  %s915_s0 = inlined_call_operand.hbm [shape: bf16[16,128], index: 0, kind: input, shape index: {}]   ;;  %s916_s1 = inlined_call_operand.hbm [shape: bf16[128,128], index: 1, kind: input, shape index: {}]   ;;  %s917_s2 = inlined_call_operand.vmem [shape: f32[1,128], index: 2, kind: input, shape index: {}]   ;;  %s918_s3 = inlined_call_operand.hbm [shape: bf16[128,128], index: 3, kind: input, shape index: {}]   ;;  %s919_s4 = inlined_call_operand.vmem [shape: f32[1,128], index: 4, kind: input, shape index: {}]   ;;  %s920_s5 = inlined_call_operand.hbm [shape: bf16[128,128], index: 5, kind: input, shape index: {}]   ;;  %s921_s6 = inlined_call_operand.vmem [shape: f32[1,128], index: 6, kind: input, shape index: {}]   ;;  %s922_s7 = inlined_call_operand.hbm [shape: bf16[16,128], index: 7, kind: output, shape index: {}]  }
   0x1   :  { %13 = vsyncpa [#allocation6], 0 }
   0x2   :  { %14 = vsyncpa [#allocation9], 0 }
   0x3   :  { %15 = vsyncpa [#allocation4], 0  ;;  %s738_s24 = smov [#allocation5]   ;;  %s739_s26 = smov [#allocation2]  }
   0x4   :  { %s33_s25 = sshll.u32 %s738_s24, 4  ;;  %s21_s27 = sshll.u32 %s739_s26, 4  ;;  %s34_s25 = int_to_ptr.vmem [resolvable:$true] %s33_s25  ;;  %s787_s27 = int_to_ptr.vmem [resolvable:$true] %s21_s27 }
   0x5   :  { %s620_s30 = scalar_lea.hbm %s916_s1, 1024 }
   0x6   :  { %p621_p0 = scmp.ne.s32.totalorder %s916_s1, %s620_s30  ;;  %p624_p1 = scmp.lt.u32.totalorder %s620_s30, %s916_s1 }
   0x8   :  { %p626_p2 = pnand %p624_p1, %p621_p0 }
   0xa   :  { %629 = shalt.err (!%p626_p2)
}
   0xb   :  { %s630_s12 = scalar_lea.vmem %s34_s25, 1024  ;;  %p635_p4 = scmp.lt.s32.totalorder %s34_s25, %s34_s25 }
   0xc   :  { %p631_p3 = scmp.ne.s32.totalorder %s34_s25, %s630_s12  ;;  %p636_p5 = scmp.lt.s32.totalorder %s630_s12, %s630_s12 }
   0xe   :  { %p637_p6 = por %p636_p5, %p635_p4 }
  0x10   :  { %p638_p7 = pnand %p637_p6, %p631_p3 }
  0x12   :  { %641 = shalt.err (!%p638_p7)
}
  0x13   :  { %s740_s13 = smov 64   ;;  %s741_s14 = smov 4  }
  0x14   :  { %39 = dma.hbm_to_vmem [thread:$0]  %s916_s1, 1024, %s34_s25, [#allocation6], %s740_s13, %s740_s13, %s741_s14  }
  0x15   :  { %s642_s19 = scalar_lea.hbm %s915_s0, 128 }
  0x16   :  { %p643_p8 = scmp.ne.s32.totalorder %s915_s0, %s642_s19  ;;  %p646_p9 = scmp.lt.u32.totalorder %s642_s19, %s915_s0 }
  0x18   :  { %p648_p10 = pnand %p646_p9, %p643_p8 }
  0x1a   :  { %651 = shalt.err (!%p648_p10)
}
  0x1b   :  { %s652_s24 = scalar_lea.vmem %s787_s27, 128  ;;  %p657_p12 = scmp.lt.s32.totalorder %s787_s27, %s787_s27 }
  0x1c   :  { %p653_p11 = scmp.ne.s32.totalorder %s787_s27, %s652_s24  ;;  %p658_p13 = scmp.lt.s32.totalorder %s652_s24, %s652_s24 }
  0x1e   :  { %p659_p0 = por %p658_p13, %p657_p12 }
  0x20   :  { %p660_p1 = pnand %p659_p0, %p653_p11 }
  0x22   :  { %663 = shalt.err (!%p660_p1)
}
  0x23   :  { %27 = dma.hbm_to_vmem [thread:$0]  %s915_s0, 128, %s787_s27, [#allocation3], %s740_s13, %s740_s13, %s741_s14  }
  0x24   :  { %s742_s26 = smov [#allocation7]   ;;  %s743_s29 = smov [#allocation8]  }
  0x25   :  { %s47_s28 = sshll.u32 %s742_s26, 4  ;;  %s61_s30 = sshll.u32 %s743_s29, 4  ;;  %s48_s28 = int_to_ptr.vmem [resolvable:$true] %s47_s28  ;;  %s824_s30 = int_to_ptr.vmem [resolvable:$true] %s61_s30 }
  0x26   :  { %s664_s10 = scalar_lea.hbm %s918_s3, 1024 }
  0x27   :  { %p665_p2 = scmp.ne.s32.totalorder %s918_s3, %s664_s10  ;;  %p668_p3 = scmp.lt.u32.totalorder %s664_s10, %s918_s3 }
  0x29   :  { %p670_p4 = pnand %p668_p3, %p665_p2 }
  0x2b   :  { %673 = shalt.err (!%p670_p4)
}
  0x2c   :  { %s674_s0 = scalar_lea.vmem %s48_s28, 1024  ;;  %p679_p6 = scmp.lt.s32.totalorder %s48_s28, %s48_s28 }
  0x2d   :  { %p675_p5 = scmp.ne.s32.totalorder %s48_s28, %s674_s0  ;;  %p680_p7 = scmp.lt.s32.totalorder %s674_s0, %s674_s0 }
  0x2f   :  { %p681_p8 = por %p680_p7, %p679_p6 }
  0x31   :  { %p682_p9 = pnand %p681_p8, %p675_p5 }
  0x33   :  { %685 = shalt.err (!%p682_p9)
}
  0x34   :  { %53 = dma.hbm_to_vmem [thread:$0]  %s918_s3, 1024, %s48_s28, [#allocation6], %s740_s13, %s740_s13, %s741_s14  }
  0x35   :  { %s686_s20 = scalar_lea.hbm %s920_s5, 1024 }
  0x36   :  { %p687_p10 = scmp.ne.s32.totalorder %s920_s5, %s686_s20  ;;  %p690_p11 = scmp.lt.u32.totalorder %s686_s20, %s920_s5 }
  0x38   :  { %p692_p12 = pnand %p690_p11, %p687_p10 }
  0x3a   :  { %695 = shalt.err (!%p692_p12)
}
  0x3b   :  { %s696_s1 = scalar_lea.vmem %s824_s30, 1024  ;;  %p701_p0 = scmp.lt.s32.totalorder %s824_s30, %s824_s30 }
  0x3c   :  { %p697_p13 = scmp.ne.s32.totalorder %s824_s30, %s696_s1  ;;  %p702_p1 = scmp.lt.s32.totalorder %s696_s1, %s696_s1 }
  0x3e   :  { %p703_p2 = por %p702_p1, %p701_p0 }
  0x40   :  { %p704_p3 = pnand %p703_p2, %p697_p13 }
  0x42   :  { %707 = shalt.err (!%p704_p3)
}
  0x43   :  { %67 = dma.hbm_to_vmem [thread:$0]  %s920_s5, 1024, %s824_s30, [#allocation9], %s740_s13, %s740_s13, %s741_s14  }
  0x44   :  { %730 = dma.done.wait [#allocation3], 128  }
  0x45   :  { %731 = vsyncadd [#allocation3], 4294967168 }
  0x46   :  { %732 = dma.done.wait [#allocation6], 2048  }
  0x47   :  { %733 = vsyncadd [#allocation6], 4294965248 }
  0x48   :  { %734 = dma.done.wait [#allocation9], 1024  }
  0x49   :  { %735 = vsyncadd [#allocation9], 4294966272  ;;  %v744_v0 = vmov 0.0   ;;  %vm745_vm0 = vmmov 0   ;;  %v595_v1 = vld [vmem:[#allocation5] sm:$0xff]   ;;  %v596_v2 = vld [vmem:[#allocation5 + $0x8] sm:$0xff]  }
  0x4a   :  { %526 = vmatprep.subr.bf16.mxu0 %v744_v0  ;;  %542 = vmatprep.mubr.msk.bf16.mxu0 %vm745_vm0, %v744_v0  ;;  %v597_v3 = vld [vmem:[#allocation5 + $0x10] sm:$0xff]   ;;  %v604_v4 = vld [vmem:[#allocation7] sm:$0xff]   ;;  %v598_v5 = vld [vmem:[#allocation5 + $0x18] sm:$0xff]   ;;  %s746_s8 = smov [#allocation10]  }
  0x4b   :  { %546 = vmatprep.subr.bf16.mxu1 %v744_v0  ;;  %562 = vmatprep.mubr.msk.bf16.mxu1 %vm745_vm0, %v744_v0  ;;  %v605_v6 = vld [vmem:[#allocation7 + $0x8] sm:$0xff]   ;;  %v599_v7 = vld [vmem:[#allocation5 + $0x20] sm:$0xff]   ;;  %v606_v8 = vld [vmem:[#allocation7 + $0x10] sm:$0xff]   ;;  %s448_s9 = sshll.u32 %s746_s8, 4  ;;  %s449_s9 = int_to_ptr.vmem [resolvable:$true] %s448_s9 }
  0x4c   :  { %527 = vmatpush3.bf16.msra.mxu0 %v595_v1  ;;  %547 = vmatpush3.bf16.msra.mxu1 %v604_v4  ;;  %v600_v9 = vld [vmem:[#allocation5 + $0x28] sm:$0xff]   ;;  %v607_v10 = vld [vmem:[#allocation7 + $0x18] sm:$0xff]   ;;  %v601_v11 = vld [vmem:[#allocation5 + $0x30] sm:$0xff]   ;;  %p713_p5 = scmp.lt.s32.totalorder %s449_s9, %s449_s9 }
  0x4d   :  { %528 = vmatprep.subr.bf16.mxu0 %v744_v0  ;;  %548 = vmatprep.subr.bf16.mxu1 %v744_v0  ;;  %v608_v12 = vld [vmem:[#allocation7 + $0x20] sm:$0xff]   ;;  %v602_v13 = vld [vmem:[#allocation5 + $0x38] sm:$0xff]   ;;  %v609_v14 = vld [vmem:[#allocation7 + $0x28] sm:$0xff]  }
  0x4e   :  { %v603_v15 = vld [vmem:[#allocation2] sm:$0xff]   ;;  %v610_v16 = vld [vmem:[#allocation7 + $0x30] sm:$0xff]   ;;  %v612_v18 = vld [vmem:[#allocation8] sm:$0xff]  }
  0x4f   :  { %v611_v17 = vld [vmem:[#allocation7 + $0x38] sm:$0xff]   ;;  %v613_v19 = vld [vmem:[#allocation8 + $0x8] sm:$0xff]   ;;  %v614_v20 = vld [vmem:[#allocation8 + $0x10] sm:$0xff]  }
  0x50   :  { %529 = vmatpush3.bf16.msra.mxu0 %v596_v2  ;;  %549 = vmatpush3.bf16.msra.mxu1 %v605_v6  ;;  %v615_v21 = vld [vmem:[#allocation8 + $0x18] sm:$0xff]   ;;  %v616_v22 = vld [vmem:[#allocation8 + $0x20] sm:$0xff]   ;;  %v617_v23 = vld [vmem:[#allocation8 + $0x28] sm:$0xff]  }
  0x51   :  { %530 = vmatprep.subr.bf16.mxu0 %v744_v0  ;;  %550 = vmatprep.subr.bf16.mxu1 %v744_v0  ;;  %v462_v24 = vld [vmem:[%s917_s2] ss:$0 sm:$0xff]  ;;  %v618_v34 = vld [vmem:[#allocation8 + $0x30] sm:$0xff]  }
  0x52   :  { %v619_v35 = vld [vmem:[#allocation8 + $0x38] sm:$0xff]  }
  0x53   :  { %v472_v36 = vld [vmem:[%s919_s4] ss:$0 sm:$0xff]  ;;  %s708_s4 = scalar_lea.vmem %s449_s9, 128 }
  0x54   :  { %531 = vmatpush3.bf16.msra.mxu0 %v597_v3  ;;  %551 = vmatpush3.bf16.msra.mxu1 %v606_v8  ;;  %v481_v46 = vld [vmem:[%s921_s6] ss:$0 sm:$0xff]  ;;  %p709_p4 = scmp.ne.s32.totalorder %s449_s9, %s708_s4  ;;  %p714_p6 = scmp.lt.s32.totalorder %s708_s4, %s708_s4 }
  0x55   :  { %532 = vmatprep.subr.bf16.mxu0 %v744_v0  ;;  %552 = vmatprep.subr.bf16.mxu1 %v744_v0 }
  0x56   :  { %p715_p7 = por %p714_p6, %p713_p5 }
  0x58   :  { %533 = vmatpush3.bf16.msra.mxu0 %v598_v5  ;;  %553 = vmatpush3.bf16.msra.mxu1 %v607_v10  ;;  %p716_p8 = pnand %p715_p7, %p709_p4 }
  0x59   :  { %534 = vmatprep.subr.bf16.mxu0 %v744_v0  ;;  %554 = vmatprep.subr.bf16.mxu1 %v744_v0 }
  0x5c   :  { %535 = vmatpush3.bf16.msra.mxu0 %v599_v7  ;;  %555 = vmatpush3.bf16.msra.mxu1 %v608_v12 }
  0x5d   :  { %536 = vmatprep.subr.bf16.mxu0 %v744_v0  ;;  %556 = vmatprep.subr.bf16.mxu1 %v744_v0 }
  0x60   :  { %537 = vmatpush3.bf16.msra.mxu0 %v600_v9  ;;  %557 = vmatpush3.bf16.msra.mxu1 %v609_v14 }
  0x61   :  { %538 = vmatprep.subr.bf16.mxu0 %v744_v0  ;;  %558 = vmatprep.subr.bf16.mxu1 %v744_v0 }
  0x64   :  { %539 = vmatpush3.bf16.msra.mxu0 %v601_v11  ;;  %559 = vmatpush3.bf16.msra.mxu1 %v610_v16 }
  0x65   :  { %540 = vmatprep.subr.bf16.mxu0 %v744_v0  ;;  %560 = vmatprep.subr.bf16.mxu1 %v744_v0 }
  0x68   :  { %541 = vmatpush3.bf16.msra.mxu0 %v602_v13  ;;  %561 = vmatpush3.bf16.msra.mxu1 %v611_v17 }
  0x69   :  { %566 = vmatprep.subr.bf16.mxu0 %v744_v0 }
  0x6b   :  { %543 = vmatmul.mubr.bf16.vlgmr.msra.gmra.mrb[0].mxu0 %v603_v15 }
  0x6c   :  { %582 = vmatprep.mubr.msk.bf16.mxu0 %vm745_vm0, %v744_v0  ;;  %567 = vmatpush3.bf16.msra.mxu0 %v612_v18 }
  0x6d   :  { %568 = vmatprep.subr.bf16.mxu0 %v744_v0 }
  0x70   :  { %569 = vmatpush3.bf16.msra.mxu0 %v613_v19 }
  0x71   :  { %570 = vmatprep.subr.bf16.mxu0 %v744_v0 }
  0x74   :  { %571 = vmatpush3.bf16.msra.mxu0 %v614_v20 }
  0x75   :  { %572 = vmatprep.subr.bf16.mxu0 %v744_v0 }
  0x78   :  { %573 = vmatpush3.bf16.msra.mxu0 %v615_v21 }
  0x79   :  { %574 = vmatprep.subr.bf16.mxu0 %v744_v0 }
  0x7c   :  { %575 = vmatpush3.bf16.msra.mxu0 %v616_v22 }
  0x7d   :  { %576 = vmatprep.subr.bf16.mxu0 %v744_v0 }
  0x80   :  { %577 = vmatpush3.bf16.msra.mxu0 %v617_v23 }
  0x81   :  { %578 = vmatprep.subr.bf16.mxu0 %v744_v0 }
  0x84   :  { %579 = vmatpush3.bf16.msra.mxu0 %v618_v34 }
  0x85   :  { %580 = vmatprep.subr.bf16.mxu0 %v744_v0 }
  0x88   :  { %581 = vmatpush3.bf16.msra.mxu0 %v619_v35 }
 0x13e   :  { %v196_v25 = vpop.f32.mrb[0].mxu0 }
 0x13f   :  { %v197_v26 = vadd.f32 %v462_v24, %v196_v25  ;;  %v544_v27 = vpop.f32.mrb[1].mxu0 }
 0x140   :  { %v199_v28 = vpop.f32.mrb[2].mxu0 }
 0x141   :  { %v200_v29 = vadd.f32 %v462_v24, %v199_v28  ;;  %v545_v30 = vpop.f32.mrb[3].mxu0  ;;  %v203_v31 = vmax.f32 %v197_v26, 0.0 }
 0x143   :  { %v204_v32 = vmax.f32 %v200_v29, 0.0 }
 0x145   :  { %v205_v33 = vpack.c.bf16 %v204_v32, %v203_v31 }
 0x147   :  { %563 = vmatmul.mubr.bf16.vlgmr.msra.gmra.mrb[0].mxu1 %v205_v33 }
 0x21a   :  { %v311_v37 = vpop.f32.mrb[0].mxu1 }
 0x21b   :  { %v312_v38 = vadd.f32 %v472_v36, %v311_v37  ;;  %v564_v39 = vpop.f32.mrb[1].mxu1 }
 0x21c   :  { %v314_v40 = vpop.f32.mrb[2].mxu1 }
 0x21d   :  { %v315_v41 = vadd.f32 %v472_v36, %v314_v40  ;;  %v565_v42 = vpop.f32.mrb[3].mxu1  ;;  %v318_v43 = vmax.f32 %v312_v38, 0.0 }
 0x21f   :  { %v319_v44 = vmax.f32 %v315_v41, 0.0 }
 0x221   :  { %v320_v45 = vpack.c.bf16 %v319_v44, %v318_v43 }
 0x223   :  { %583 = vmatmul.mubr.bf16.vlgmr.msra.gmra.mrb[4].mxu0 %v320_v45 }
 0x2f6   :  { %v426_v47 = vpop.f32.mrb[4].mxu0 }
 0x2f7   :  { %v584_v48 = vpop.f32.mrb[5].mxu0  ;;  %v427_v50 = vadd.f32 %v481_v46, %v426_v47 }
 0x2f8   :  { %v429_v49 = vpop.f32.mrb[6].mxu0 }
 0x2f9   :  { %v430_v51 = vadd.f32 %v481_v46, %v429_v49  ;;  %v585_v52 = vpop.f32.mrb[7].mxu0 }
 0x2fb   :  { %v497_v53 = vpack.c.bf16 %v430_v51, %v427_v50 }
 0x2fd   :  { %498 = vst [vmem:[#allocation10] sm:$0xff] %v497_v53  }
 0x2fe   :  { %719 = shalt.err (!%p716_p8)
}
 0x2ff   :  { %s720_s11 = scalar_lea.hbm %s922_s7, 128 }
 0x300   :  { %p721_p9 = scmp.ne.s32.totalorder %s922_s7, %s720_s11  ;;  %p724_p10 = scmp.lt.u32.totalorder %s720_s11, %s922_s7 }
 0x302   :  { %p726_p11 = pnand %p724_p10, %p721_p9 }
 0x304   :  { %729 = shalt.err (!%p726_p11)
}
 0x305   :  { %454 = dma.vmem_to_hbm [thread:$0]  %s449_s9, 128, %s922_s7, [#allocation4], %s740_s13, %s740_s13, %s741_s14  }
 0x306   :  { %736 = dma.done.wait [#allocation4], 128  }
 0x307   :  { %737 = vsyncadd [#allocation4], 4294967168 }
 0x308   :  { %458 = vsyncpa [#allocation3], 1 }
 0x309   :  { %459 = vsyncpa [#allocation6], 1 }
 0x30a   :  { %460 = vsyncpa [#allocation9], 1 }
 0x30b   :  { %461 = vsyncpa [#allocation4], 1 }

// kernel: tpu_custom_call.1
= control target key start
LH: loop header
LB: loop body
LE: loop exit
PB: predicated region body
PF: predicated region fallthrough
CT: control target
= control target key end

     0   :  { %12 = vsyncpa [#allocation3], 0  ;;  %s915_s0 = inlined_call_operand.hbm [shape: bf16[16,128], index: 0, kind: input, shape index: {}]   ;;  %s916_s1 = inlined_call_operand.hbm [shape: bf16[128,128], index: 1, kind: input, shape index: {}]   ;;  %s917_s2 = inlined_call_operand.vmem [shape: f32[1,128], index: 2, kind: input, shape index: {}]   ;;  %s918_s3 = inlined_call_operand.hbm [shape: bf16[128,128], index: 3, kind: input, shape index: {}]   ;;  %s919_s4 = inlined_call_operand.vmem [shape: f32[1,128], index: 4, kind: input, shape index: {}]   ;;  %s920_s5 = inlined_call_operand.hbm [shape: bf16[128,128], index: 5, kind: input, shape index: {}]   ;;  %s921_s6 = inlined_call_operand.vmem [shape: f32[1,128], index: 6, kind: input, shape index: {}]   ;;  %s922_s7 = inlined_call_operand.hbm [shape: bf16[16,128], index: 7, kind: output, shape index: {}]  }
   0x1   :  { %13 = vsyncpa [#allocation6], 0 }
   0x2   :  { %14 = vsyncpa [#allocation9], 0 }
   0x3   :  { %15 = vsyncpa [#allocation4], 0  ;;  %s738_s24 = smov [#allocation5]   ;;  %s739_s26 = smov [#allocation2]  }
   0x4   :  { %s33_s25 = sshll.u32 %s738_s24, 4  ;;  %s21_s27 = sshll.u32 %s739_s26, 4  ;;  %s34_s25 = int_to_ptr.vmem [resolvable:$true] %s33_s25  ;;  %s787_s27 = int_to_ptr.vmem [resolvable:$true] %s21_s27 }
   0x5   :  { %s620_s30 = scalar_lea.hbm %s916_s1, 1024 }
   0x6   :  { %p621_p0 = scmp.ne.s32.totalorder %s916_s1, %s620_s30  ;;  %p624_p1 = scmp.lt.u32.totalorder %s620_s30, %s916_s1 }
   0x8   :  { %p626_p2 = pnand %p624_p1, %p621_p0 }
   0xa   :  { %629 = shalt.err (!%p626_p2)
}
   0xb   :  { %s630_s12 = scalar_lea.vmem %s34_s25, 1024  ;;  %p635_p4 = scmp.lt.s32.totalorder %s34_s25, %s34_s25 }
   0xc   :  { %p631_p3 = scmp.ne.s32.totalorder %s34_s25, %s630_s12  ;;  %p636_p5 = scmp.lt.s32.totalorder %s630_s12, %s630_s12 }
   0xe   :  { %p637_p6 = por %p636_p5, %p635_p4 }
  0x10   :  { %p638_p7 = pnand %p637_p6, %p631_p3 }
  0x12   :  { %641 = shalt.err (!%p638_p7)
}
  0x13   :  { %s740_s13 = smov 64   ;;  %s741_s14 = smov 4  }
  0x14   :  { %39 = dma.hbm_to_vmem [thread:$0]  %s916_s1, 1024, %s34_s25, [#allocation6], %s740_s13, %s740_s13, %s741_s14  }
  0x15   :  { %s642_s19 = scalar_lea.hbm %s915_s0, 128 }
  0x16   :  { %p643_p8 = scmp.ne.s32.totalorder %s915_s0, %s642_s19  ;;  %p646_p9 = scmp.lt.u32.totalorder %s642_s19, %s915_s0 }
  0x18   :  { %p648_p10 = pnand %p646_p9, %p643_p8 }
  0x1a   :  { %651 = shalt.err (!%p648_p10)
}
  0x1b   :  { %s652_s24 = scalar_lea.vmem %s787_s27, 128  ;;  %p657_p12 = scmp.lt.s32.totalorder %s787_s27, %s787_s27 }
  0x1c   :  { %p653_p11 = scmp.ne.s32.totalorder %s787_s27, %s652_s24  ;;  %p658_p13 = scmp.lt.s32.totalorder %s652_s24, %s652_s24 }
  0x1e   :  { %p659_p0 = por %p658_p13, %p657_p12 }
  0x20   :  { %p660_p1 = pnand %p659_p0, %p653_p11 }
  0x22   :  { %663 = shalt.err (!%p660_p1)
}
  0x23   :  { %27 = dma.hbm_to_vmem [thread:$0]  %s915_s0, 128, %s787_s27, [#allocation3], %s740_s13, %s740_s13, %s741_s14  }
  0x24   :  { %s742_s26 = smov [#allocation7]   ;;  %s743_s29 = smov [#allocation8]  }
  0x25   :  { %s47_s28 = sshll.u32 %s742_s26, 4  ;;  %s61_s30 = sshll.u32 %s743_s29, 4  ;;  %s48_s28 = int_to_ptr.vmem [resolvable:$true] %s47_s28  ;;  %s824_s30 = int_to_ptr.vmem [resolvable:$true] %s61_s30 }
  0x26   :  { %s664_s10 = scalar_lea.hbm %s918_s3, 1024 }
  0x27   :  { %p665_p2 = scmp.ne.s32.totalorder %s918_s3, %s664_s10  ;;  %p668_p3 = scmp.lt.u32.totalorder %s664_s10, %s918_s3 }
  0x29   :  { %p670_p4 = pnand %p668_p3, %p665_p2 }
  0x2b   :  { %673 = shalt.err (!%p670_p4)
}
  0x2c   :  { %s674_s0 = scalar_lea.vmem %s48_s28, 1024  ;;  %p679_p6 = scmp.lt.s32.totalorder %s48_s28, %s48_s28 }
  0x2d   :  { %p675_p5 = scmp.ne.s32.totalorder %s48_s28, %s674_s0  ;;  %p680_p7 = scmp.lt.s32.totalorder %s674_s0, %s674_s0 }
  0x2f   :  { %p681_p8 = por %p680_p7, %p679_p6 }
  0x31   :  { %p682_p9 = pnand %p681_p8, %p675_p5 }
  0x33   :  { %685 = shalt.err (!%p682_p9)
}
  0x34   :  { %53 = dma.hbm_to_vmem [thread:$0]  %s918_s3, 1024, %s48_s28, [#allocation6], %s740_s13, %s740_s13, %s741_s14  }
  0x35   :  { %s686_s20 = scalar_lea.hbm %s920_s5, 1024 }
  0x36   :  { %p687_p10 = scmp.ne.s32.totalorder %s920_s5, %s686_s20  ;;  %p690_p11 = scmp.lt.u32.totalorder %s686_s20, %s920_s5 }
  0x38   :  { %p692_p12 = pnand %p690_p11, %p687_p10 }
  0x3a   :  { %695 = shalt.err (!%p692_p12)
}
  0x3b   :  { %s696_s1 = scalar_lea.vmem %s824_s30, 1024  ;;  %p701_p0 = scmp.lt.s32.totalorder %s824_s30, %s824_s30 }
  0x3c   :  { %p697_p13 = scmp.ne.s32.totalorder %s824_s30, %s696_s1  ;;  %p702_p1 = scmp.lt.s32.totalorder %s696_s1, %s696_s1 }
  0x3e   :  { %p703_p2 = por %p702_p1, %p701_p0 }
  0x40   :  { %p704_p3 = pnand %p703_p2, %p697_p13 }
  0x42   :  { %707 = shalt.err (!%p704_p3)
}
  0x43   :  { %67 = dma.hbm_to_vmem [thread:$0]  %s920_s5, 1024, %s824_s30, [#allocation9], %s740_s13, %s740_s13, %s741_s14  }
  0x44   :  { %730 = dma.done.wait [#allocation3], 128  }
  0x45   :  { %731 = vsyncadd [#allocation3], 4294967168 }
  0x46   :  { %732 = dma.done.wait [#allocation6], 2048  }
  0x47   :  { %733 = vsyncadd [#allocation6], 4294965248 }
  0x48   :  { %734 = dma.done.wait [#allocation9], 1024  }
  0x49   :  { %735 = vsyncadd [#allocation9], 4294966272  ;;  %v744_v0 = vmov 0.0   ;;  %vm745_vm0 = vmmov 0   ;;  %v595_v1 = vld [vmem:[#allocation5] sm:$0xff]   ;;  %v596_v2 = vld [vmem:[#allocation5 + $0x8] sm:$0xff]  }
  0x4a   :  { %526 = vmatprep.subr.bf16.mxu0 %v744_v0  ;;  %542 = vmatprep.mubr.msk.bf16.mxu0 %vm745_vm0, %v744_v0  ;;  %v597_v3 = vld [vmem:[#allocation5 + $0x10] sm:$0xff]   ;;  %v604_v4 = vld [vmem:[#allocation7] sm:$0xff]   ;;  %v598_v5 = vld [vmem:[#allocation5 + $0x18] sm:$0xff]   ;;  %s746_s8 = smov [#allocation10]  }
  0x4b   :  { %546 = vmatprep.subr.bf16.mxu1 %v744_v0  ;;  %562 = vmatprep.mubr.msk.bf16.mxu1 %vm745_vm0, %v744_v0  ;;  %v605_v6 = vld [vmem:[#allocation7 + $0x8] sm:$0xff]   ;;  %v599_v7 = vld [vmem:[#allocation5 + $0x20] sm:$0xff]   ;;  %v606_v8 = vld [vmem:[#allocation7 + $0x10] sm:$0xff]   ;;  %s448_s9 = sshll.u32 %s746_s8, 4  ;;  %s449_s9 = int_to_ptr.vmem [resolvable:$true] %s448_s9 }
  0x4c   :  { %527 = vmatpush3.bf16.msra.mxu0 %v595_v1  ;;  %547 = vmatpush3.bf16.msra.mxu1 %v604_v4  ;;  %v600_v9 = vld [vmem:[#allocation5 + $0x28] sm:$0xff]   ;;  %v607_v10 = vld [vmem:[#allocation7 + $0x18] sm:$0xff]   ;;  %v601_v11 = vld [vmem:[#allocation5 + $0x30] sm:$0xff]   ;;  %p713_p5 = scmp.lt.s32.totalorder %s449_s9, %s449_s9 }
  0x4d   :  { %528 = vmatprep.subr.bf16.mxu0 %v744_v0  ;;  %548 = vmatprep.subr.bf16.mxu1 %v744_v0  ;;  %v608_v12 = vld [vmem:[#allocation7 + $0x20] sm:$0xff]   ;;  %v602_v13 = vld [vmem:[#allocation5 + $0x38] sm:$0xff]   ;;  %v609_v14 = vld [vmem:[#allocation7 + $0x28] sm:$0xff]  }
  0x4e   :  { %v603_v15 = vld [vmem:[#allocation2] sm:$0xff]   ;;  %v610_v16 = vld [vmem:[#allocation7 + $0x30] sm:$0xff]   ;;  %v612_v18 = vld [vmem:[#allocation8] sm:$0xff]  }
  0x4f   :  { %v611_v17 = vld [vmem:[#allocation7 + $0x38] sm:$0xff]   ;;  %v613_v19 = vld [vmem:[#allocation8 + $0x8] sm:$0xff]   ;;  %v614_v20 = vld [vmem:[#allocation8 + $0x10] sm:$0xff]  }
  0x50   :  { %529 = vmatpush3.bf16.msra.mxu0 %v596_v2  ;;  %549 = vmatpush3.bf16.msra.mxu1 %v605_v6  ;;  %v615_v21 = vld [vmem:[#allocation8 + $0x18] sm:$0xff]   ;;  %v616_v22 = vld [vmem:[#allocation8 + $0x20] sm:$0xff]   ;;  %v617_v23 = vld [vmem:[#allocation8 + $0x28] sm:$0xff]  }
  0x51   :  { %530 = vmatprep.subr.bf16.mxu0 %v744_v0  ;;  %550 = vmatprep.subr.bf16.mxu1 %v744_v0  ;;  %v462_v24 = vld [vmem:[%s917_s2] ss:$0 sm:$0xff]  ;;  %v618_v34 = vld [vmem:[#allocation8 + $0x30] sm:$0xff]  }
  0x52   :  { %v619_v35 = vld [vmem:[#allocation8 + $0x38] sm:$0xff]  }
  0x53   :  { %v472_v36 = vld [vmem:[%s919_s4] ss:$0 sm:$0xff]  ;;  %s708_s4 = scalar_lea.vmem %s449_s9, 128 }
  0x54   :  { %531 = vmatpush3.bf16.msra.mxu0 %v597_v3  ;;  %551 = vmatpush3.bf16.msra.mxu1 %v606_v8  ;;  %v481_v46 = vld [vmem:[%s921_s6] ss:$0 sm:$0xff]  ;;  %p709_p4 = scmp.ne.s32.totalorder %s449_s9, %s708_s4  ;;  %p714_p6 = scmp.lt.s32.totalorder %s708_s4, %s708_s4 }
  0x55   :  { %532 = vmatprep.subr.bf16.mxu0 %v744_v0  ;;  %552 = vmatprep.subr.bf16.mxu1 %v744_v0 }
  0x56   :  { %p715_p7 = por %p714_p6, %p713_p5 }
  0x58   :  { %533 = vmatpush3.bf16.msra.mxu0 %v598_v5  ;;  %553 = vmatpush3.bf16.msra.mxu1 %v607_v10  ;;  %p716_p8 = pnand %p715_p7, %p709_p4 }
  0x59   :  { %534 = vmatprep.subr.bf16.mxu0 %v744_v0  ;;  %554 = vmatprep.subr.bf16.mxu1 %v744_v0 }
  0x5c   :  { %535 = vmatpush3.bf16.msra.mxu0 %v599_v7  ;;  %555 = vmatpush3.bf16.msra.mxu1 %v608_v12 }
  0x5d   :  { %536 = vmatprep.subr.bf16.mxu0 %v744_v0  ;;  %556 = vmatprep.subr.bf16.mxu1 %v744_v0 }
  0x60   :  { %537 = vmatpush3.bf16.msra.mxu0 %v600_v9  ;;  %557 = vmatpush3.bf16.msra.mxu1 %v609_v14 }
  0x61   :  { %538 = vmatprep.subr.bf16.mxu0 %v744_v0  ;;  %558 = vmatprep.subr.bf16.mxu1 %v744_v0 }
  0x64   :  { %539 = vmatpush3.bf16.msra.mxu0 %v601_v11  ;;  %559 = vmatpush3.bf16.msra.mxu1 %v610_v16 }
  0x65   :  { %540 = vmatprep.subr.bf16.mxu0 %v744_v0  ;;  %560 = vmatprep.subr.bf16.mxu1 %v744_v0 }
  0x68   :  { %541 = vmatpush3.bf16.msra.mxu0 %v602_v13  ;;  %561 = vmatpush3.bf16.msra.mxu1 %v611_v17 }
  0x69   :  { %566 = vmatprep.subr.bf16.mxu0 %v744_v0 }
  0x6b   :  { %543 = vmatmul.mubr.bf16.vlgmr.msra.gmra.mrb[0].mxu0 %v603_v15 }
  0x6c   :  { %582 = vmatprep.mubr.msk.bf16.mxu0 %vm745_vm0, %v744_v0  ;;  %567 = vmatpush3.bf16.msra.mxu0 %v612_v18 }
  0x6d   :  { %568 = vmatprep.subr.bf16.mxu0 %v744_v0 }
  0x70   :  { %569 = vmatpush3.bf16.msra.mxu0 %v613_v19 }
  0x71   :  { %570 = vmatprep.subr.bf16.mxu0 %v744_v0 }
  0x74   :  { %571 = vmatpush3.bf16.msra.mxu0 %v614_v20 }
  0x75   :  { %572 = vmatprep.subr.bf16.mxu0 %v744_v0 }
  0x78   :  { %573 = vmatpush3.bf16.msra.mxu0 %v615_v21 }
  0x79   :  { %574 = vmatprep.subr.bf16.mxu0 %v744_v0 }
  0x7c   :  { %575 = vmatpush3.bf16.msra.mxu0 %v616_v22 }
  0x7d   :  { %576 = vmatprep.subr.bf16.mxu0 %v744_v0 }
  0x80   :  { %577 = vmatpush3.bf16.msra.mxu0 %v617_v23 }
  0x81   :  { %578 = vmatprep.subr.bf16.mxu0 %v744_v0 }
  0x84   :  { %579 = vmatpush3.bf16.msra.mxu0 %v618_v34 }
  0x85   :  { %580 = vmatprep.subr.bf16.mxu0 %v744_v0 }
  0x88   :  { %581 = vmatpush3.bf16.msra.mxu0 %v619_v35 }
 0x13e   :  { %v196_v25 = vpop.f32.mrb[0].mxu0 }
 0x13f   :  { %v197_v26 = vadd.f32 %v462_v24, %v196_v25  ;;  %v544_v27 = vpop.f32.mrb[1].mxu0 }
 0x140   :  { %v199_v28 = vpop.f32.mrb[2].mxu0 }
 0x141   :  { %v200_v29 = vadd.f32 %v462_v24, %v199_v28  ;;  %v545_v30 = vpop.f32.mrb[3].mxu0  ;;  %v203_v31 = vmax.f32 %v197_v26, 0.0 }
 0x143   :  { %v204_v32 = vmax.f32 %v200_v29, 0.0 }
 0x145   :  { %v205_v33 = vpack.c.bf16 %v204_v32, %v203_v31 }
 0x147   :  { %563 = vmatmul.mubr.bf16.vlgmr.msra.gmra.mrb[0].mxu1 %v205_v33 }
 0x21a   :  { %v311_v37 = vpop.f32.mrb[0].mxu1 }
 0x21b   :  { %v312_v38 = vadd.f32 %v472_v36, %v311_v37  ;;  %v564_v39 = vpop.f32.mrb[1].mxu1 }
 0x21c   :  { %v314_v40 = vpop.f32.mrb[2].mxu1 }
 0x21d   :  { %v315_v41 = vadd.f32 %v472_v36, %v314_v40  ;;  %v565_v42 = vpop.f32.mrb[3].mxu1  ;;  %v318_v43 = vmax.f32 %v312_v38, 0.0 }
 0x21f   :  { %v319_v44 = vmax.f32 %v315_v41, 0.0 }
 0x221   :  { %v320_v45 = vpack.c.bf16 %v319_v44, %v318_v43 }
 0x223   :  { %583 = vmatmul.mubr.bf16.vlgmr.msra.gmra.mrb[4].mxu0 %v320_v45 }
 0x2f6   :  { %v426_v47 = vpop.f32.mrb[4].mxu0 }
 0x2f7   :  { %v584_v48 = vpop.f32.mrb[5].mxu0  ;;  %v427_v50 = vadd.f32 %v481_v46, %v426_v47 }
 0x2f8   :  { %v429_v49 = vpop.f32.mrb[6].mxu0 }
 0x2f9   :  { %v430_v51 = vadd.f32 %v481_v46, %v429_v49  ;;  %v585_v52 = vpop.f32.mrb[7].mxu0 }
 0x2fb   :  { %v497_v53 = vpack.c.bf16 %v430_v51, %v427_v50 }
 0x2fd   :  { %498 = vst [vmem:[#allocation10] sm:$0xff] %v497_v53  }
 0x2fe   :  { %719 = shalt.err (!%p716_p8)
}
 0x2ff   :  { %s720_s11 = scalar_lea.hbm %s922_s7, 128 }
 0x300   :  { %p721_p9 = scmp.ne.s32.totalorder %s922_s7, %s720_s11  ;;  %p724_p10 = scmp.lt.u32.totalorder %s720_s11, %s922_s7 }
 0x302   :  { %p726_p11 = pnand %p724_p10, %p721_p9 }
 0x304   :  { %729 = shalt.err (!%p726_p11)
}
 0x305   :  { %454 = dma.vmem_to_hbm [thread:$0]  %s449_s9, 128, %s922_s7, [#allocation4], %s740_s13, %s740_s13, %s741_s14  }
 0x306   :  { %736 = dma.done.wait [#allocation4], 128  }
 0x307   :  { %737 = vsyncadd [#allocation4], 4294967168 }
 0x308   :  { %458 = vsyncpa [#allocation3], 1 }
 0x309   :  { %459 = vsyncpa [#allocation6], 1 }
 0x30a   :  { %460 = vsyncpa [#allocation9], 1 }
 0x30b   :  { %461 = vsyncpa [#allocation4], 1 }

</bundles_post_ra>
